<compile_context>
chip_gen: v5e
topology: v5e:2x2
jax: 0.10.0
libtpu: 0.0.40
codegen_flags: <defaults>
</compile_context>

<pallas_src>
import functools

import jax
import jax.numpy as jnp
from jax.experimental import pallas as pl
from jax.experimental.pallas import tpu as pltpu


def _two_layer_kernel(x_ref, w1_ref, b1_ref, w2_ref, b2_ref, o_ref):
    # fc1 on the MXU: cast x to bf16 in-kernel, accumulate in f32.
    x_bf = x_ref[...].astype(jnp.bfloat16)
    h = jnp.dot(x_bf, w1_ref[...], preferred_element_type=jnp.float32)
    # Bias + ReLU in f32 on the VPU (safe on v5e: no bf16 VALU needed).
    h = jnp.maximum(h + b1_ref[...], 0.0)
    # fc2: bf16 operands on the MXU, f32 accumulation.
    y = jnp.dot(h.astype(jnp.bfloat16), w2_ref[...],
                preferred_element_type=jnp.float32)
    # Lane-dense (128-wide) bf16 store: halves the dominant writeback stream.
    o_ref[...] = (y + b2_ref[...]).astype(o_ref.dtype)


def prepare_params(w1, b1, w2, b2):
    """One-time parameter prep (call at init, NOT per forward).

    w1: (D, H) f32   (transposed vs PyTorch's (H, D))
    b1: (H,) or (1, H) f32
    w2: (H, C) f32   (transposed vs PyTorch's (C, H))
    b2: (C,) or (1, C) f32
    Returns (w1_bf16, b1_f32, w2_pad_bf16, b2_pad_f32, num_classes).
    """
    D, H = w1.shape
    C = w2.shape[1]
    C_pad = 128 * pl.cdiv(C, 128)

    w1_b = w1.astype(jnp.bfloat16)
    b1_f = jnp.reshape(b1, (1, H)).astype(jnp.float32)
    w2_p = jnp.zeros((H, C_pad), jnp.bfloat16).at[:, :C].set(
        w2.astype(jnp.bfloat16))
    b2_p = jnp.zeros((1, C_pad), jnp.float32).at[:, :C].set(
        jnp.reshape(b2, (1, C)).astype(jnp.float32))
    return w1_b, b1_f, w2_p, b2_p, C


def _choose_batch_tile(B, max_batch_tile):
    """16-aligned batch tile; >=2 grid tiles when the padded batch allows."""
    max_batch_tile = max(16, (max_batch_tile // 16) * 16)
    B_pad = 16 * pl.cdiv(B, 16)
    TB = min(max_batch_tile, B_pad)
    if B_pad > 16 and B_pad // TB < 2:
        # Split into ~2 tiles so v7x's two TensorCores both get work.
        TB = 16 * pl.cdiv(B_pad, 32)
    B_pad = TB * pl.cdiv(B_pad, TB)
    return B_pad, TB


@functools.partial(jax.jit, static_argnames=("num_classes", "max_batch_tile"))
def two_layer_nn(x, w1_b, b1_f, w2_p, b2_p, *, num_classes,
                 max_batch_tile=1024):
    """Fused two-layer MLP forward: relu(x @ W1 + b1) @ W2 + b2.

    x: (B, D) f32; params come from prepare_params(). Returns (B, C) f32.
    """
    B, D = x.shape
    H = w1_b.shape[1]
    C_pad = w2_p.shape[1]

    B_pad, TB = _choose_batch_tile(B, max_batch_tile)

    # Only batch padding per call; weights were prepared once at init.
    x_p = x if B_pad == B else jnp.zeros((B_pad, D), x.dtype).at[:B].set(x)

    out = pl.pallas_call(
        _two_layer_kernel,
        out_shape=jax.ShapeDtypeStruct((B_pad, C_pad), jnp.bfloat16),
        grid_spec=pl.GridSpec(
            grid=(B_pad // TB,),
            in_specs=[
                pl.BlockSpec((TB, D), lambda i: (i, 0)),      # x: batch-tiled
                pl.BlockSpec((D, H), lambda i: (0, 0)),       # W1: resident
                pl.BlockSpec((1, H), lambda i: (0, 0)),       # b1: resident
                pl.BlockSpec((H, C_pad), lambda i: (0, 0)),   # W2: resident
                pl.BlockSpec((1, C_pad), lambda i: (0, 0)),   # b2: resident
            ],
            out_specs=pl.BlockSpec((TB, C_pad), lambda i: (i, 0)),
        ),
        compiler_params=pltpu.CompilerParams(
            dimension_semantics=("parallel",)),
    )(x_p, w1_b, b1_f, w2_p, b2_p)

    # Tiny slice + cast, fused inside the jit.
    return out[:B, :num_classes].astype(jnp.float32)


if __name__ == "__main__":
    # Shapes consistent with the module: batch=8, input_dim=32,
    # hidden=512 (module default), num_classes=3.
    B, D, H, C = 8, 32, 512, 3

    key = jax.random.PRNGKey(0)
    kx, k1, kb1, k2, kb2 = jax.random.split(key, 5)

    x = jax.random.normal(kx, (B, D), dtype=jnp.float32)

    # Deterministic init mimicking nn.Linear's uniform(-1/sqrt(fan_in), ...).
    bound1 = 1.0 / jnp.sqrt(D)
    w1 = jax.random.uniform(k1, (D, H), minval=-bound1, maxval=bound1,
                            dtype=jnp.float32)
    b1 = jax.random.uniform(kb1, (1, H), minval=-bound1, maxval=bound1,
                            dtype=jnp.float32)

    bound2 = 1.0 / jnp.sqrt(H)
    w2 = jax.random.uniform(k2, (H, C), minval=-bound2, maxval=bound2,
                            dtype=jnp.float32)
    b2 = jax.random.uniform(kb2, (1, C), minval=-bound2, maxval=bound2,
                            dtype=jnp.float32)

    # One-time parameter prep (hoisted out of the forward path).
    w1_b, b1_f, w2_p, b2_p, num_classes = prepare_params(w1, b1, w2, b2)

    out = two_layer_nn(x, w1_b, b1_f, w2_p, b2_p, num_classes=num_classes)
    out = jax.block_until_ready(out)

    # Reference in plain f32 JAX (same semantics as the PyTorch forward).
    ref = jnp.maximum(x @ w1 + b1, 0.0) @ w2 + b2
    assert out.shape == (B, C)
    # bf16 MXU operands + bf16 output store with f32 accumulation:
    # relaxed tolerance vs the pure-f32 reference.
    assert jnp.allclose(out, ref, atol=3e-2, rtol=3e-2), (
        f"max abs err {jnp.max(jnp.abs(out - ref))}")

    print("KERNEL_OK")
</pallas_src>

<mosaic_0001>
module attributes {stable_mosaic.version = 11 : i64} {
  func.func @_two_layer_kernel(%arg0: i32, %arg1: memref<16x32xf32, #tpu.memory_space<vmem>>, %arg2: memref<32x512xbf16, #tpu.memory_space<vmem>>, %arg3: memref<1x512xf32, #tpu.memory_space<vmem>>, %arg4: memref<512x128xbf16, #tpu.memory_space<vmem>>, %arg5: memref<1x128xf32, #tpu.memory_space<vmem>>, %arg6: memref<16x128xbf16, #tpu.memory_space<vmem>>) attributes {dimension_semantics = [#tpu.dimension_semantics<parallel>], iteration_bounds = array<i64: 1>, scalar_prefetch = 0 : i64, scratch_operands = 0 : i64, tpu.core_type = #tpu.core_type<tc>, window_params = [{transform_indices = @transform_0, window_bounds = array<i64: 16, 32>}, {pipeline_mode = #tpu.pipeline_mode<synchronous>, transform_indices = @transform_1, window_bounds = array<i64: 32, 512>}, {pipeline_mode = #tpu.pipeline_mode<synchronous>, transform_indices = @transform_2, window_bounds = array<i64: 1, 512>}, {pipeline_mode = #tpu.pipeline_mode<synchronous>, transform_indices = @transform_3, window_bounds = array<i64: 512, 128>}, {pipeline_mode = #tpu.pipeline_mode<synchronous>, transform_indices = @transform_4, window_bounds = array<i64: 1, 128>}, {transform_indices = @transform_5, window_bounds = array<i64: 16, 128>}]} {
    %c0 = arith.constant 0 : index
    %c0_0 = arith.constant 0 : index
    %0 = vector.load %arg1[%c0, %c0_0] : memref<16x32xf32, #tpu.memory_space<vmem>>, vector<16x32xf32>
    %1 = arith.truncf %0 : vector<16x32xf32> to vector<16x32xbf16>
    %c0_1 = arith.constant 0 : index
    %c0_2 = arith.constant 0 : index
    %2 = vector.load %arg2[%c0_1, %c0_2] : memref<32x512xbf16, #tpu.memory_space<vmem>>, vector<32x512xbf16>
    %cst = arith.constant dense<0.000000e+00> : vector<16x512xf32>
    %3 = tpu.matmul %1, %2, %cst {dimension_numbers = #tpu.dot_dimension_numbers<[1], [0], [0], [1], [0, 0, 1, 1], [], []>} : vector<16x32xbf16>, vector<32x512xbf16>, vector<16x512xf32> -> vector<16x512xf32>
    %c0_3 = arith.constant 0 : index
    %c0_4 = arith.constant 0 : index
    %4 = vector.load %arg3[%c0_3, %c0_4] : memref<1x512xf32, #tpu.memory_space<vmem>>, vector<1x512xf32>
    %5 = vector.broadcast %4 : vector<1x512xf32> to vector<16x512xf32>
    %6 = arith.addf %3, %5 : vector<16x512xf32>
    %cst_5 = arith.constant 0.000000e+00 : f32
    %7 = vector.broadcast %cst_5 : f32 to vector<16x512xf32>
    %8 = arith.maximumf %6, %7 : vector<16x512xf32>
    %9 = arith.truncf %8 : vector<16x512xf32> to vector<16x512xbf16>
    %c0_6 = arith.constant 0 : index
    %c0_7 = arith.constant 0 : index
    %10 = vector.load %arg4[%c0_6, %c0_7] : memref<512x128xbf16, #tpu.memory_space<vmem>>, vector<512x128xbf16>
    %cst_8 = arith.constant dense<0.000000e+00> : vector<16x128xf32>
    %11 = tpu.matmul %9, %10, %cst_8 {dimension_numbers = #tpu.dot_dimension_numbers<[1], [0], [0], [1], [0, 0, 1, 1], [], []>} : vector<16x512xbf16>, vector<512x128xbf16>, vector<16x128xf32> -> vector<16x128xf32>
    %c0_9 = arith.constant 0 : index
    %c0_10 = arith.constant 0 : index
    %12 = vector.load %arg5[%c0_9, %c0_10] : memref<1x128xf32, #tpu.memory_space<vmem>>, vector<1x128xf32>
    %13 = vector.broadcast %12 : vector<1x128xf32> to vector<16x128xf32>
    %14 = arith.addf %11, %13 : vector<16x128xf32>
    %15 = arith.truncf %14 : vector<16x128xf32> to vector<16x128xbf16>
    %c0_11 = arith.constant 0 : index
    %c0_12 = arith.constant 0 : index
    %16 = vector.load %arg6[%c0_11, %c0_12] : memref<16x128xbf16, #tpu.memory_space<vmem>>, vector<16x128xbf16>
    tpu.vector_store %arg6[%c0_11, %c0_12], %15 {strides = array<i32>} : memref<16x128xbf16, #tpu.memory_space<vmem>>, vector<16x128xbf16>,
    return
  }
  func.func @transform_0(%arg0: i32) -> (i32, i32) {
    %c0_i32 = arith.constant 0 : i32
    %c0_i32_0 = arith.constant 0 : i32
    return %arg0, %c0_i32 : i32, i32
  }
  func.func @transform_1(%arg0: i32) -> (i32, i32) {
    %c0_i32 = arith.constant 0 : i32
    %c0_i32_0 = arith.constant 0 : i32
    %c0_i32_1 = arith.constant 0 : i32
    return %c0_i32, %c0_i32_0 : i32, i32
  }
  func.func @transform_2(%arg0: i32) -> (i32, i32) {
    %c0_i32 = arith.constant 0 : i32
    %c0_i32_0 = arith.constant 0 : i32
    %c0_i32_1 = arith.constant 0 : i32
    return %c0_i32, %c0_i32_0 : i32, i32
  }
  func.func @transform_3(%arg0: i32) -> (i32, i32) {
    %c0_i32 = arith.constant 0 : i32
    %c0_i32_0 = arith.constant 0 : i32
    %c0_i32_1 = arith.constant 0 : i32
    return %c0_i32, %c0_i32_0 : i32, i32
  }
  func.func @transform_4(%arg0: i32) -> (i32, i32) {
    %c0_i32 = arith.constant 0 : i32
    %c0_i32_0 = arith.constant 0 : i32
    %c0_i32_1 = arith.constant 0 : i32
    return %c0_i32, %c0_i32_0 : i32, i32
  }
  func.func @transform_5(%arg0: i32) -> (i32, i32) {
    %c0_i32 = arith.constant 0 : i32
    %c0_i32_0 = arith.constant 0 : i32
    return %arg0, %c0_i32 : i32, i32
  }
}

</mosaic_0001>

<bundles_post_ra>
// kernel: two_layer_nn.1
= control target key start
LH: loop header
LB: loop body
LE: loop exit
PB: predicated region body
PF: predicated region fallthrough
CT: control target
= control target key end

     0   :  { %10 = vsyncpa [#allocation3], 0  ;;  %s837_s0 = inlined_call_operand.vmem [shape: f32[16,32], index: 0, kind: input, shape index: {}]   ;;  %s838_s1 = inlined_call_operand.hbm [shape: bf16[32,512], index: 1, kind: input, shape index: {}]   ;;  %s839_s2 = inlined_call_operand.vmem [shape: f32[1,512], index: 2, kind: input, shape index: {}]   ;;  %s840_s3 = inlined_call_operand.hbm [shape: bf16[512,128], index: 3, kind: input, shape index: {}]   ;;  %s841_s4 = inlined_call_operand.vmem [shape: f32[1,128], index: 4, kind: input, shape index: {}]   ;;  %s842_s5 = inlined_call_operand.vmem [shape: bf16[16,128], index: 5, kind: output, shape index: {}]  }
   0x1   :  { %s18_s20 = sshll.u32 %s838_s1, 4  ;;  %s19_s20 = int_to_ptr.hbm [resolvable:$true] %s18_s20 }
   0x2   :  { %11 = vsyncpa [#allocation5], 0  ;;  %s780_s21 = smov [#allocation2]   ;;  %s33_s25 = sshll.u32 %s840_s3, 4  ;;  %s34_s25 = int_to_ptr.hbm [resolvable:$true] %s33_s25 }
   0x3   :  { %s20_s22 = sshll.u32 %s780_s21, 4  ;;  %s781_s26 = smov 256   ;;  %s21_s22 = int_to_ptr.vmem [resolvable:$true] %s20_s22 }
   0x4   :  { %s782_s27 = smov 16   ;;  %s783_s28 = smov [#allocation4]  }
   0x5   :  { %26 = dma.hbm_to_vmem [thread:$0]  %s19_s20, 1024, %s21_s22, [#allocation3], %s781_s26, %s781_s26, %s782_s27  }
   0x6   :  { %s35_s29 = sshll.u32 %s783_s28, 4  ;;  %s784_s30 = smov 64   ;;  %s36_s29 = int_to_ptr.vmem [resolvable:$true] %s35_s29 }
   0x7   :  { %s785_s6 = smov 4  }
   0x8   :  { %41 = dma.hbm_to_vmem [thread:$0]  %s34_s25, 4096, %s36_s29, [#allocation5], %s784_s30, %s784_s30, %s785_s6  }
   0x9   :  { %776 = dma.done.wait [#allocation3], 1024  }
   0xa   :  { %777 = vsyncadd [#allocation3], 4294966272 }
   0xb   :  { %778 = dma.done.wait [#allocation5], 4096  }
   0xc   :  { %779 = vsyncadd [#allocation5], 4294963200  ;;  %v530_v0 = vld [vmem:[#allocation2 + $0x20] sm:$0xf]  ;;  %v682_v1 = vld [vmem:[#allocation2 + $0x2c] sm:$0xf0] }
   0xd   :  { %v680_v2 = vld [vmem:[#allocation2 + $0x24] sm:$0xf]  ;;  %v531_v3 = vor.u32 %v682_v1, %v530_v0  ;;  %v532_v4 = vld [vmem:[#allocation2 + $0x30] sm:$0xf0]  ;;  %v538_v5 = vld [vmem:[#allocation2 + $0x28] sm:$0xf] }
   0xe   :  { %v683_v6 = vld [vmem:[#allocation2 + $0x34] sm:$0xf0]  ;;  %v535_v7 = vor.u32 %v680_v2, %v532_v4  ;;  %v681_v9 = vld [vmem:[#allocation2 + $0x2c] sm:$0xf]  ;;  %v540_v10 = vld [vmem:[#allocation2 + $0x38] sm:$0xf0] }
   0xf   :  { %v539_v8 = vor.u32 %v683_v6, %v538_v5  ;;  %v514_v11 = vld [vmem:[#allocation2] sm:$0xf]  ;;  %124 = vmatpush.bf16.msra.mxu0 %v531_v3  ;;  %v543_v12 = vor.u32 %v681_v9, %v540_v10  ;;  %v678_v13 = vld [vmem:[#allocation2 + $0xc] sm:$0xf0]  ;;  %v676_v14 = vld [vmem:[#allocation2 + $0x4] sm:$0xf] }
  0x10   :  { %v516_v15 = vld [vmem:[#allocation2 + $0x10] sm:$0xf0]  ;;  %138 = vmatpush.bf16.msra.mxu1 %v535_v7  ;;  %v515_v16 = vor.u32 %v678_v13, %v514_v11  ;;  %v522_v18 = vld [vmem:[#allocation2 + $0x8] sm:$0xf]  ;;  %v679_v19 = vld [vmem:[#allocation2 + $0x14] sm:$0xf0] }
  0x11   :  { %152 = vmatpush.bf16.msra.mxu2 %v539_v8  ;;  %v519_v17 = vor.u32 %v676_v14, %v516_v15  ;;  %v677_v20 = vld [vmem:[#allocation2 + $0xc] sm:$0xf]  ;;  %166 = vmatpush.bf16.msra.mxu3 %v543_v12  ;;  %v523_v21 = vor.u32 %v679_v19, %v522_v18  ;;  %v524_v22 = vld [vmem:[#allocation2 + $0x18] sm:$0xf0]  ;;  %v53_v23 = vld [vmem:[%s837_s0] sm:$0xff]  ;;  %vm114_vm0 = vcmask 261120  }
  0x12   :  { %v54_v24 = vld [vmem:[%s837_s0 + $0x8] sm:$0xff]  ;;  %v527_v25 = vor.u32 %v677_v20, %v524_v22  ;;  %v691_v27 = vld [vmem:[#allocation4 + $0x38] sm:$0xff]  ;;  %v690_v30 = vld [vmem:[#allocation4 + $0x30] sm:$0xff] }
  0x13   :  { %v55_v26 = vpack.c.bf16 %v54_v24, %v53_v23  ;;  %v699_v28 = vld [vmem:[#allocation4 + $0x78] sm:$0xff]  ;;  %125 = vmatpush.bf16.msra.mxu0 %v515_v16  ;;  %v698_v32 = vld [vmem:[#allocation4 + $0x70] sm:$0xff]  ;;  %v689_v34 = vld [vmem:[#allocation4 + $0x28] sm:$0xff] }
  0x14   :  { %139 = vmatpush.bf16.msra.mxu1 %v519_v17  ;;  %v707_v29 = vld [vmem:[#allocation4 + $0xb8] sm:$0xff]  ;;  %v706_v33 = vld [vmem:[#allocation4 + $0xb0] sm:$0xff]  ;;  %v697_v36 = vld [vmem:[#allocation4 + $0x68] sm:$0xff] }
  0x15   :  { %153 = vmatpush.bf16.msra.mxu2 %v523_v21  ;;  %167 = vmatpush.bf16.msra.mxu3 %v527_v25  ;;  %v715_v31 = vld [vmem:[#allocation4 + $0xf8] sm:$0xff]  ;;  %v714_v35 = vld [vmem:[#allocation4 + $0xf0] sm:$0xff]  ;;  %v705_v37 = vld [vmem:[#allocation4 + $0xa8] sm:$0xff] }
  0x16   :  { %544 = vmatmul.msk.bf16.vlgmr.msra.gmra.mxu0 %vm114_vm0, %v55_v26  ;;  %v688_v38 = vld [vmem:[#allocation4 + $0x20] sm:$0xff]  ;;  %v713_v39 = vld [vmem:[#allocation4 + $0xe8] sm:$0xff]  ;;  %v687_v41 = vld [vmem:[#allocation4 + $0x18] sm:$0xff] }
  0x17   :  { %446 = vmatpush.bf16.msrb.mxu0 %v691_v27  ;;  %545 = vmatmul.msk.bf16.vlgmr.msra.gmra.mxu1 %vm114_vm0, %v55_v26  ;;  %v696_v40 = vld [vmem:[#allocation4 + $0x60] sm:$0xff]  ;;  %v695_v42 = vld [vmem:[#allocation4 + $0x58] sm:$0xff]  ;;  %v686_v45 = vld [vmem:[#allocation4 + $0x10] sm:$0xff] }
  0x18   :  { %460 = vmatpush.bf16.msrb.mxu1 %v699_v28  ;;  %546 = vmatmul.msk.bf16.vlgmr.msra.gmra.mxu2 %vm114_vm0, %v55_v26  ;;  %v704_v43 = vld [vmem:[#allocation4 + $0xa0] sm:$0xff]  ;;  %v694_v46 = vld [vmem:[#allocation4 + $0x50] sm:$0xff]  ;;  %v703_v47 = vld [vmem:[#allocation4 + $0x98] sm:$0xff] }
  0x19   :  { %547 = vmatmul.msk.bf16.vlgmr.msra.gmra.mxu3 %vm114_vm0, %v55_v26  ;;  %474 = vmatpush.bf16.msrb.mxu2 %v707_v29  ;;  %v712_v44 = vld [vmem:[#allocation4 + $0xe0] sm:$0xff]  ;;  %v711_v48 = vld [vmem:[#allocation4 + $0xd8] sm:$0xff]  ;;  %v685_v49 = vld [vmem:[#allocation4 + $0x8] sm:$0xff] }
  0x1a   :  { %488 = vmatpush.bf16.msrb.mxu3 %v715_v31  ;;  %v693_v50 = vld [vmem:[#allocation4 + $0x48] sm:$0xff]  ;;  %v702_v51 = vld [vmem:[#allocation4 + $0x90] sm:$0xff]  ;;  %v684_v53 = vld [vmem:[#allocation4] sm:$0xff] }
  0x1b   :  { %447 = vmatpush.bf16.msrb.mxu0 %v690_v30  ;;  %v710_v52 = vld [vmem:[#allocation4 + $0xd0] sm:$0xff]  ;;  %v692_v54 = vld [vmem:[#allocation4 + $0x40] sm:$0xff]  ;;  %v701_v55 = vld [vmem:[#allocation4 + $0x88] sm:$0xff] }
  0x1c   :  { %461 = vmatpush.bf16.msrb.mxu1 %v698_v32  ;;  %v709_v56 = vld [vmem:[#allocation4 + $0xc8] sm:$0xff]  ;;  %v700_v57 = vld [vmem:[#allocation4 + $0x80] sm:$0xff] }
  0x1d   :  { %475 = vmatpush.bf16.msrb.mxu2 %v706_v33  ;;  %v708_v58 = vld [vmem:[#allocation4 + $0xc0] sm:$0xff] }
  0x1e   :  { %489 = vmatpush.bf16.msrb.mxu3 %v714_v35  ;;  %v64_v59 = vld [vmem:[%s839_s2] sm:$0xf] }
  0x1f   :  { %448 = vmatpush.bf16.msrb.mxu0 %v689_v34  ;;  %v66_v61 = vperm.slane %v64_v59, 0  ;;  %v67_v63 = vperm.slane %v64_v59, 1  ;;  %v68_v9 = vperm.slane %v64_v59, 2  ;;  %v69_v11 = vperm.slane %v64_v59, 3  ;;  %v727_v30 = vld [vmem:[%s841_s4] ss:$0 sm:$0xff] }
  0x20   :  { %462 = vmatpush.bf16.msrb.mxu1 %v697_v36 }
  0x21   :  { %476 = vmatpush.bf16.msrb.mxu2 %v705_v37 }
  0x22   :  { %490 = vmatpush.bf16.msrb.mxu3 %v713_v39 }
  0x23   :  { %449 = vmatpush.bf16.msrb.mxu0 %v688_v38 }
  0x24   :  { %463 = vmatpush.bf16.msrb.mxu1 %v696_v40 }
  0x25   :  { %477 = vmatpush.bf16.msrb.mxu2 %v704_v43 }
  0x26   :  { %491 = vmatpush.bf16.msrb.mxu3 %v712_v44 }
  0x27   :  { %450 = vmatpush.bf16.msrb.mxu0 %v687_v41 }
  0x28   :  { %464 = vmatpush.bf16.msrb.mxu1 %v695_v42 }
  0x29   :  { %478 = vmatpush.bf16.msrb.mxu2 %v703_v47 }
  0x2a   :  { %492 = vmatpush.bf16.msrb.mxu3 %v711_v48 }
  0x2b   :  { %451 = vmatpush.bf16.msrb.mxu0 %v686_v45 }
  0x2c   :  { %465 = vmatpush.bf16.msrb.mxu1 %v694_v46 }
  0x2d   :  { %479 = vmatpush.bf16.msrb.mxu2 %v702_v51 }
  0x2e   :  { %493 = vmatpush.bf16.msrb.mxu3 %v710_v52 }
  0x2f   :  { %452 = vmatpush.bf16.msrb.mxu0 %v685_v49 }
  0x30   :  { %466 = vmatpush.bf16.msrb.mxu1 %v693_v50 }
  0x31   :  { %480 = vmatpush.bf16.msrb.mxu2 %v701_v55 }
  0x32   :  { %494 = vmatpush.bf16.msrb.mxu3 %v709_v56 }
  0x33   :  { %453 = vmatpush.bf16.msrb.mxu0 %v684_v53 }
  0x34   :  { %467 = vmatpush.bf16.msrb.mxu1 %v692_v54 }
  0x35   :  { %481 = vmatpush.bf16.msrb.mxu2 %v700_v57 }
  0x36   :  { %495 = vmatpush.bf16.msrb.mxu3 %v708_v58 }
  0x93   :  { %v127_v60 = vpop.f32.mrf.mxu0 }
  0x94   :  { %v141_v62 = vpop.f32.mrf.mxu1  ;;  %v128_v0 = vadd.f32 %v127_v60, %v66_v61 }
  0x95   :  { %v142_v1 = vadd.f32 %v141_v62, %v67_v63 }
  0x96   :  { %v174_v5 = vmax.f32 %v128_v0, 0.0 }
  0x97   :  { %v175_v8 = vmax.f32 %v142_v1, 0.0 }
  0x9b   :  { %v155_v2 = vpop.f32.mrf.mxu2  ;;  %v129_v4 = vpop.f32.mrf.mxu0 }
  0x9c   :  { %v169_v3 = vpop.f32.mrf.mxu3  ;;  %v130_v6 = vadd.f32 %v129_v4, %v66_v61  ;;  %v143_v7 = vpop.f32.mrf.mxu1  ;;  %v156_v15 = vadd.f32 %v155_v2, %v68_v9 }
  0x9d   :  { %v144_v10 = vadd.f32 %v143_v7, %v67_v63  ;;  %v170_v17 = vadd.f32 %v169_v3, %v69_v11 }
  0x9e   :  { %v178_v12 = vmax.f32 %v130_v6, 0.0  ;;  %v176_v22 = vmax.f32 %v156_v15, 0.0 }
  0x9f   :  { %v179_v13 = vmax.f32 %v144_v10, 0.0  ;;  %v177_v24 = vmax.f32 %v170_v17, 0.0 }
  0xa0   :  { %v182_v14 = vpack.c.bf16 %v178_v12, %v174_v5 }
  0xa1   :  { %v183_v16 = vpack.c.bf16 %v179_v13, %v175_v8 }
  0xa2   :  { %454 = vmatmul.bf16.vlgmr.msrb.gmra.mxu0 %v182_v14 }
  0xa3   :  { %v157_v18 = vpop.f32.mrf.mxu2  ;;  %468 = vmatmul.bf16.vlgmr.msrb.gmra.mxu1 %v183_v16 }
  0xa4   :  { %v158_v19 = vadd.f32 %v157_v18, %v68_v9  ;;  %v171_v20 = vpop.f32.mrf.mxu3 }
  0xa5   :  { %v172_v21 = vadd.f32 %v171_v20, %v69_v11 }
  0xa6   :  { %v180_v23 = vmax.f32 %v158_v19, 0.0 }
  0xa7   :  { %v181_v25 = vmax.f32 %v172_v21, 0.0 }
  0xa8   :  { %v184_v26 = vpack.c.bf16 %v180_v23, %v176_v22 }
  0xa9   :  { %v185_v27 = vpack.c.bf16 %v181_v25, %v177_v24 }
  0xaa   :  { %482 = vmatmul.bf16.vlgmr.msrb.gmra.mxu2 %v184_v26 }
  0xab   :  { %496 = vmatmul.bf16.vlgmr.msrb.gmra.mxu3 %v185_v27 }
 0x11f   :  { %v455_v28 = vpop.f32.mrf.mxu0 }
 0x120   :  { %v469_v29 = vpop.f32.mrf.mxu1  ;;  %v456_v33 = vadd.f32 %v727_v30, %v455_v28 }
 0x122   :  { %v470_v36 = vadd.f32 %v469_v29, %v456_v33 }
 0x127   :  { %v457_v31 = vpop.f32.mrf.mxu0 }
 0x128   :  { %v458_v35 = vadd.f32 %v727_v30, %v457_v31  ;;  %v471_v37 = vpop.f32.mrf.mxu1 }
 0x12a   :  { %v472_v38 = vadd.f32 %v471_v37, %v458_v35 }
 0x12d   :  { %v483_v32 = vpop.f32.mrf.mxu2 }
 0x12e   :  { %v497_v34 = vpop.f32.mrf.mxu3  ;;  %v484_v39 = vadd.f32 %v483_v32, %v470_v36 }
 0x130   :  { %v498_v43 = vadd.f32 %v497_v34, %v484_v39 }
 0x135   :  { %v485_v40 = vpop.f32.mrf.mxu2 }
 0x136   :  { %v486_v41 = vadd.f32 %v485_v40, %v472_v38  ;;  %v499_v42 = vpop.f32.mrf.mxu3 }
 0x138   :  { %v500_v44 = vadd.f32 %v499_v42, %v486_v41 }
 0x13a   :  { %v719_v45 = vpack.c.bf16 %v500_v44, %v498_v43 }
 0x13c   :  { %720 = vst [vmem:[%s842_s5] sm:$0xff] %v719_v45  }
 0x13d   :  { %510 = vsyncpa [#allocation3], 1 }
 0x13e   :  { %511 = vsyncpa [#allocation5], 1 }

</bundles_post_ra>
